<compile_context>
chip_gen: v5e
topology: v5e:2x2
jax: 0.10.0
libtpu: 0.0.40
codegen_flags: <defaults>
</compile_context>

<pallas_src>
import functools

import jax
import jax.numpy as jnp
from jax.experimental import pallas as pl
from jax.experimental.pallas import tpu as pltpu


# ----------------------------- Pallas kernel --------------------------------

def _ensemble_mlp_kernel(x_ref, w_ref, b_ref, o_ref, *, e_block, hidden, d_out):
    """Fused Linear -> ReLU -> Linear for E_BLOCK ensemble members (one grid step).

    x_ref : (B, D_in)                         VMEM f32 (resident, constant index_map)
    w_ref : (D_in, E_BLOCK*(H + D_out))       VMEM bf16, packed [w1_0|w1_1|...|w2_0|w2_1|...]
    b_ref : (1,    E_BLOCK*(H + D_out))       VMEM f32,  packed [b1_0|b1_1|...|b2_0|b2_1|...]
    o_ref : (E_BLOCK, B, D_out)               VMEM f32
    """
    hb = e_block * hidden

    # bf16 inputs to the MXU, f32 accumulation.
    xb = x_ref[...].astype(jnp.bfloat16)

    # Fused layer 1 over all E_BLOCK members: (B, D_in) x (D_in, E_BLOCK*H),
    # N = E_BLOCK*H >= 256 fills the 256-lane MXU on v6e/v7x.
    h = jnp.dot(xb, w_ref[:, :hb], preferred_element_type=jnp.float32)
    h = jnp.maximum(h + b_ref[:, :hb], 0.0)
    h16 = h.astype(jnp.bfloat16)

    # Layer 2 per member (block-diagonal structure); static lane-aligned slices.
    for e in range(e_block):
        lo = hb + e * d_out
        y = jnp.dot(h16[:, e * hidden:(e + 1) * hidden], w_ref[:, lo:lo + d_out],
                    preferred_element_type=jnp.float32)
        o_ref[e] = (y + b_ref[:, lo:lo + d_out]).astype(o_ref.dtype)


def make_ensemble_mlp_forward(e_block: int, hidden: int, d_out: int):
    """Returns the stateless-model forward(params, x) used by FunctionalModule.

    params = (w_packed, b_packed) in the kernel-friendly packed layout produced
    by `pack_ensemble_params` (done once at parameter extraction time).
    x: (B, D_in) shared by all ensemble members.  Returns (E, B, D_out) f32.
    """

    def forward(params, x):
        w_packed, b_packed = params
        groups, d_in, packed_w = w_packed.shape
        num_members = groups * e_block
        batch = x.shape[0]

        flops = 2 * num_members * batch * (d_in * hidden + hidden * d_out)
        bytes_accessed = (x.size * x.dtype.itemsize
                          + w_packed.size * w_packed.dtype.itemsize
                          + b_packed.size * b_packed.dtype.itemsize
                          + num_members * batch * d_out * x.dtype.itemsize)

        kernel = functools.partial(_ensemble_mlp_kernel,
                                   e_block=e_block, hidden=hidden, d_out=d_out)

        return pl.pallas_call(
            kernel,
            out_shape=jax.ShapeDtypeStruct((num_members, batch, d_out), x.dtype),
            grid=(groups,),
            in_specs=[
                # x: constant block index -> DMA'd once, resident across the grid.
                pl.BlockSpec((batch, d_in), lambda g: (0, 0)),
                # One packed weight slab per group (leading group dim squeezed).
                pl.BlockSpec((None, d_in, packed_w), lambda g: (g, 0, 0)),
                # One packed bias slab per group.
                pl.BlockSpec((None, 1, packed_w), lambda g: (g, 0, 0)),
            ],
            # E_BLOCK members' outputs written per step: block covers rows
            # [g*E_BLOCK, (g+1)*E_BLOCK) of the (E, B, D_out) output.
            out_specs=pl.BlockSpec((e_block, batch, d_out), lambda g: (g, 0, 0)),
            compiler_params=pltpu.CompilerParams(
                dimension_semantics=("parallel",)),
            cost_estimate=pl.CostEstimate(
                flops=flops, transcendentals=0, bytes_accessed=bytes_accessed),
        )(x, w_packed, b_packed)

    return forward


# --------------------- one-time parameter packing (init) --------------------

def pack_ensemble_params(w1, b1, w2, b2, e_block):
    """PyTorch layout -> packed kernel layout.  Done ONCE at parameter
    extraction time (outside the hot path) — no per-call transposes.

    w1: (E, H, D_in)  b1: (E, H)       (nn.Linear (out, in) / (out,) layout)
    w2: (E, D_out, H) b2: (E, D_out)

    Returns:
      w_packed: (E//e_block, D_in, e_block*(H + D_out))  bf16
                per group: [w1_0^T | w1_1^T | ... | w2_0^T | w2_1^T | ...]
      b_packed: (E//e_block, 1,    e_block*(H + D_out))  f32
    """
    E, H, D_in = w1.shape
    D_out = w2.shape[1]
    assert E % e_block == 0
    assert H == D_in, "row-packing of [w1^T | w2^T] requires H == D_in"
    G = E // e_block

    w1_t = jnp.transpose(w1, (0, 2, 1))  # (E, D_in, H)
    w2_t = jnp.transpose(w2, (0, 2, 1))  # (E, H, D_out)

    w1_g = (w1_t.reshape(G, e_block, D_in, H)
            .transpose(0, 2, 1, 3).reshape(G, D_in, e_block * H))
    w2_g = (w2_t.reshape(G, e_block, H, D_out)
            .transpose(0, 2, 1, 3).reshape(G, H, e_block * D_out))
    w_packed = jnp.concatenate([w1_g, w2_g], axis=-1).astype(jnp.bfloat16)

    b1_g = b1.reshape(G, 1, e_block * H).astype(jnp.float32)
    b2_g = b2.reshape(G, 1, e_block * D_out).astype(jnp.float32)
    b_packed = jnp.concatenate([b1_g, b2_g], axis=-1)

    return w_packed, b_packed


# ------------------------ FunctionalModule equivalent -----------------------

def make_split_names(lst):
    return [name.split('.') for name in lst]


class FunctionalModule:
    """JAX analogue of functorch's FunctionalModule: holds a stateless model
    callable and parameter names; forward takes the parameters explicitly."""
    # TODO(synk): the meta-device Parameter swapping (_swap_state /
    # extract_weights) is Python nn.Module bookkeeping with no Pallas
    # equivalent; only the functional calling convention is reproduced.

    def __init__(self, stateless_model, param_names):
        self.stateless_model = stateless_model
        self.param_names = param_names
        self.split_names = make_split_names(param_names)

    @staticmethod
    def _create_from(param_names, stateless_model, params):
        return FunctionalModule(stateless_model, param_names), params

    def forward(self, params, *args, **kwargs):
        return self.stateless_model(params, *args, **kwargs)

    __call__ = forward


# ---------------------------------- main -------------------------------------

if __name__ == "__main__":
    # Lane-dense small shapes: ensemble of 4 MLPs, batch 8, 128-wide features.
    E, B, D_IN, H, D_OUT = 4, 8, 128, 128, 128
    # 2 members per grid step -> grid=(2,): amortizes per-step overhead while
    # keeping 2 "parallel" steps for v7x's 2 TensorCores.  (On single-TC
    # v5e/v6e, E_BLOCK = E would fuse to a single step.)
    E_BLOCK = 2

    key = jax.random.PRNGKey(0)
    k_x, k_w1, k_b1, k_w2, k_b2 = jax.random.split(key, 5)

    x = jax.random.normal(k_x, (B, D_IN), dtype=jnp.float32)

    # PyTorch nn.Linear layouts: weight (out, in), bias (out,), per member.
    w1 = jax.random.normal(k_w1, (E, H, D_IN), dtype=jnp.float32) * (1.0 / D_IN ** 0.5)
    b1 = jax.random.normal(k_b1, (E, H), dtype=jnp.float32) * 0.01
    w2 = jax.random.normal(k_w2, (E, D_OUT, H), dtype=jnp.float32) * (1.0 / H ** 0.5)
    b2 = jax.random.normal(k_b2, (E, D_OUT), dtype=jnp.float32) * 0.01

    # One-time packing into the kernel layout (bf16 weights, fused per-group slabs).
    packed_params = pack_ensemble_params(w1, b1, w2, b2, E_BLOCK)
    param_names = ["fc1.weight", "fc1.bias", "fc2.weight", "fc2.bias"]

    func_model, params = FunctionalModule._create_from(
        param_names, make_ensemble_mlp_forward(E_BLOCK, H, D_OUT), packed_params)

    out = jax.block_until_ready(func_model(params, x))
    assert out.shape == (E, B, D_OUT)

    # Reference 1: same mixed-precision recipe (bf16 MXU inputs, f32 accum) in pure JAX.
    w1_bf = jnp.transpose(w1, (0, 2, 1)).astype(jnp.bfloat16)  # (E, D_in, H)
    w2_bf = jnp.transpose(w2, (0, 2, 1)).astype(jnp.bfloat16)  # (E, H, D_out)

    def member(w1e, b1e, w2e, b2e):
        h = jnp.dot(x.astype(jnp.bfloat16), w1e, preferred_element_type=jnp.float32)
        h = jnp.maximum(h + b1e[None, :], 0.0)
        y = jnp.dot(h.astype(jnp.bfloat16), w2e, preferred_element_type=jnp.float32)
        return y + b2e[None, :]

    ref_bf16 = jax.vmap(member)(w1_bf, b1, w2_bf, b2)
    assert jnp.allclose(out, ref_bf16, atol=5e-3, rtol=5e-3), "mismatch vs bf16 reference"

    # Reference 2: full-f32 semantics of the original module (loose tolerance
    # because the kernel uses bf16 weights/activations on the MXU).
    ref_f32 = jax.vmap(
        lambda w1e, b1e, w2e, b2e:
            jnp.maximum(x @ w1e.T + b1e, 0.0) @ w2e.T + b2e
    )(w1, b1, w2, b2)
    assert jnp.allclose(out, ref_f32, atol=1e-1, rtol=1e-1), "mismatch vs f32 reference"

    print("KERNEL_OK")
</pallas_src>

<mosaic_0001>
module attributes {stable_mosaic.version = 11 : i64} {
  func.func @_ensemble_mlp_kernel(%arg0: i32, %arg1: memref<8x128xf32, #tpu.memory_space<vmem>>, %arg2: memref<1x128x512xbf16, #tpu.memory_space<vmem>>, %arg3: memref<1x1x512xf32, #tpu.memory_space<vmem>>, %arg4: memref<2x8x128xf32, #tpu.memory_space<vmem>>) attributes {dimension_semantics = [#tpu.dimension_semantics<parallel>], iteration_bounds = array<i64: 2>, scalar_prefetch = 0 : i64, scratch_operands = 0 : i64, tpu.core_type = #tpu.core_type<tc>, window_params = [{pipeline_mode = #tpu.pipeline_mode<synchronous>, transform_indices = @transform_0, window_bounds = array<i64: 8, 128>}, {transform_indices = @transform_1, window_bounds = array<i64: 1, 128, 512>}, {transform_indices = @transform_2, window_bounds = array<i64: 1, 1, 512>}, {transform_indices = @transform_3, window_bounds = array<i64: 2, 8, 128>}]} {
    %c0 = arith.constant 0 : index
    %c0_0 = arith.constant 0 : index
    %0 = vector.load %arg1[%c0, %c0_0] : memref<8x128xf32, #tpu.memory_space<vmem>>, vector<8x128xf32>
    %1 = arith.truncf %0 : vector<8x128xf32> to vector<8x128xbf16>
    %c0_1 = arith.constant 0 : index
    %c0_2 = arith.constant 0 : index
    %c0_3 = arith.constant 0 : index
    %2 = vector.load %arg2[%c0_1, %c0_2, %c0_3] : memref<1x128x512xbf16, #tpu.memory_space<vmem>>, vector<1x128x256xbf16>
    %3 = vector.shape_cast %2 : vector<1x128x256xbf16> to vector<128x256xbf16>
    %cst = arith.constant dense<0.000000e+00> : vector<8x256xf32>
    %4 = tpu.matmul %1, %3, %cst {dimension_numbers = #tpu.dot_dimension_numbers<[1], [0], [0], [1], [0, 0, 1, 1], [], []>} : vector<8x128xbf16>, vector<128x256xbf16>, vector<8x256xf32> -> vector<8x256xf32>
    %c0_4 = arith.constant 0 : index
    %c0_5 = arith.constant 0 : index
    %c0_6 = arith.constant 0 : index
    %5 = vector.load %arg3[%c0_4, %c0_5, %c0_6] : memref<1x1x512xf32, #tpu.memory_space<vmem>>, vector<1x1x256xf32>
    %6 = vector.shape_cast %5 : vector<1x1x256xf32> to vector<1x256xf32>
    %7 = vector.broadcast %6 : vector<1x256xf32> to vector<8x256xf32>
    %8 = arith.addf %4, %7 : vector<8x256xf32>
    %cst_7 = arith.constant 0.000000e+00 : f32
    %9 = vector.broadcast %cst_7 : f32 to vector<8x256xf32>
    %10 = arith.maximumf %8, %9 : vector<8x256xf32>
    %11 = arith.truncf %10 : vector<8x256xf32> to vector<8x256xbf16>
    %12 = vector.extract_strided_slice %11 {offsets = [0, 0], sizes = [8, 128], strides = [1, 1]} : vector<8x256xbf16> to vector<8x128xbf16>
    %c0_8 = arith.constant 0 : index
    %c0_9 = arith.constant 0 : index
    %c256 = arith.constant 256 : index
    %13 = vector.load %arg2[%c0_8, %c0_9, %c256] : memref<1x128x512xbf16, #tpu.memory_space<vmem>>, vector<1x128x128xbf16>
    %14 = vector.shape_cast %13 : vector<1x128x128xbf16> to vector<128x128xbf16>
    %cst_10 = arith.constant dense<0.000000e+00> : vector<8x128xf32>
    %15 = tpu.matmul %12, %14, %cst_10 {dimension_numbers = #tpu.dot_dimension_numbers<[1], [0], [0], [1], [0, 0, 1, 1], [], []>} : vector<8x128xbf16>, vector<128x128xbf16>, vector<8x128xf32> -> vector<8x128xf32>
    %c0_11 = arith.constant 0 : index
    %c0_12 = arith.constant 0 : index
    %c256_13 = arith.constant 256 : index
    %16 = vector.load %arg3[%c0_11, %c0_12, %c256_13] : memref<1x1x512xf32, #tpu.memory_space<vmem>>, vector<1x1x128xf32>
    %17 = vector.shape_cast %16 : vector<1x1x128xf32> to vector<1x128xf32>
    %18 = vector.broadcast %17 : vector<1x128xf32> to vector<8x128xf32>
    %19 = arith.addf %15, %18 : vector<8x128xf32>
    %c0_14 = arith.constant 0 : index
    %c0_15 = arith.constant 0 : index
    %c0_16 = arith.constant 0 : index
    %20 = vector.load %arg4[%c0_14, %c0_15, %c0_16] : memref<2x8x128xf32, #tpu.memory_space<vmem>>, vector<1x8x128xf32>
    %21 = vector.shape_cast %20 : vector<1x8x128xf32> to vector<8x128xf32>
    %22 = vector.shape_cast %19 : vector<8x128xf32> to vector<1x8x128xf32>
    tpu.vector_store %arg4[%c0_14, %c0_15, %c0_16], %22 {strides = array<i32>} : memref<2x8x128xf32, #tpu.memory_space<vmem>>, vector<1x8x128xf32>,
    %23 = vector.extract_strided_slice %11 {offsets = [0, 128], sizes = [8, 128], strides = [1, 1]} : vector<8x256xbf16> to vector<8x128xbf16>
    %c0_17 = arith.constant 0 : index
    %c0_18 = arith.constant 0 : index
    %c384 = arith.constant 384 : index
    %24 = vector.load %arg2[%c0_17, %c0_18, %c384] : memref<1x128x512xbf16, #tpu.memory_space<vmem>>, vector<1x128x128xbf16>
    %25 = vector.shape_cast %24 : vector<1x128x128xbf16> to vector<128x128xbf16>
    %cst_19 = arith.constant dense<0.000000e+00> : vector<8x128xf32>
    %26 = tpu.matmul %23, %25, %cst_19 {dimension_numbers = #tpu.dot_dimension_numbers<[1], [0], [0], [1], [0, 0, 1, 1], [], []>} : vector<8x128xbf16>, vector<128x128xbf16>, vector<8x128xf32> -> vector<8x128xf32>
    %c0_20 = arith.constant 0 : index
    %c0_21 = arith.constant 0 : index
    %c384_22 = arith.constant 384 : index
    %27 = vector.load %arg3[%c0_20, %c0_21, %c384_22] : memref<1x1x512xf32, #tpu.memory_space<vmem>>, vector<1x1x128xf32>
    %28 = vector.shape_cast %27 : vector<1x1x128xf32> to vector<1x128xf32>
    %29 = vector.broadcast %28 : vector<1x128xf32> to vector<8x128xf32>
    %30 = arith.addf %26, %29 : vector<8x128xf32>
    %c1 = arith.constant 1 : index
    %c0_23 = arith.constant 0 : index
    %c0_24 = arith.constant 0 : index
    %31 = vector.load %arg4[%c1, %c0_23, %c0_24] : memref<2x8x128xf32, #tpu.memory_space<vmem>>, vector<1x8x128xf32>
    %32 = vector.shape_cast %31 : vector<1x8x128xf32> to vector<8x128xf32>
    %33 = vector.shape_cast %30 : vector<8x128xf32> to vector<1x8x128xf32>
    tpu.vector_store %arg4[%c1, %c0_23, %c0_24], %33 {strides = array<i32>} : memref<2x8x128xf32, #tpu.memory_space<vmem>>, vector<1x8x128xf32>,
    return
  }
  func.func @transform_0(%arg0: i32) -> (i32, i32) {
    %c0_i32 = arith.constant 0 : i32
    %c0_i32_0 = arith.constant 0 : i32
    %c0_i32_1 = arith.constant 0 : i32
    return %c0_i32, %c0_i32_0 : i32, i32
  }
  func.func @transform_1(%arg0: i32) -> (i32, i32, i32) {
    %c0_i32 = arith.constant 0 : i32
    %c0_i32_0 = arith.constant 0 : i32
    %c0_i32_1 = arith.constant 0 : i32
    return %arg0, %c0_i32, %c0_i32_0 : i32, i32, i32
  }
  func.func @transform_2(%arg0: i32) -> (i32, i32, i32) {
    %c0_i32 = arith.constant 0 : i32
    %c0_i32_0 = arith.constant 0 : i32
    %c0_i32_1 = arith.constant 0 : i32
    return %arg0, %c0_i32, %c0_i32_0 : i32, i32, i32
  }
  func.func @transform_3(%arg0: i32) -> (i32, i32, i32) {
    %c0_i32 = arith.constant 0 : i32
    %c0_i32_0 = arith.constant 0 : i32
    %c0_i32_1 = arith.constant 0 : i32
    return %arg0, %c0_i32, %c0_i32_0 : i32, i32, i32
  }
}

</mosaic_0001>

<bundles_post_ra>
// kernel: tpu_custom_call.1
= control target key start
LH: loop header
LB: loop body
LE: loop exit
PB: predicated region body
PF: predicated region fallthrough
CT: control target
= control target key end

     0   :  { %s1347_s0 = inlined_call_operand.hbm [shape: f32[8,128], index: 0, kind: input, shape index: {}]   ;;  %s1348_s1 = inlined_call_operand.hbm [shape: bf16[2,128,512], index: 1, kind: input, shape index: {}]   ;;  %s1349_s2 = inlined_call_operand.hbm [shape: f32[2,1,512], index: 2, kind: input, shape index: {}]   ;;  %s1350_s3 = inlined_call_operand.hbm [shape: f32[4,8,128], index: 3, kind: output, shape index: {}]  }
   0x1   :  { %1351 = sst [smem:[#allocation12_spill]] %s1347_s0 }
   0x2   :  { %8 = vsyncpa [#allocation3], 0 }
   0x3   :  { %9 = vsyncpa [#allocation6], 0 }
   0x4   :  { %11 = vsyncpa [#allocation6 + $0x1], 0 }
   0x5   :  { %12 = vsyncpa [#allocation4], 0 }
   0x6   :  { %14 = vsyncpa [#allocation4 + $0x1], 0  ;;  %s1103_s12 = smov 0   ;;  %s1105_s13 = smov 0  }
   0x7   :  { %s1107_s14 = smov 0   ;;  %s1109_s15 = smov 0  }
   0x8 LB: > { %s1124_s16 = sadd.s32 1, %s1076_s15   ;;  %s48_s17 = sadd.s32 1, %s1072_s14  ;;  %s1076_s15 = sphi %s1109_s15, %s1362_s15   ;;  %s1072_s14 = sphi %s1107_s14, %s1361_s14   ;;  %s1068_s13 = sphi %s1105_s13, %s1360_s13   ;;  %s1064_s12 = sphi %s1103_s12, %s1359_s12  }
   0x9   : > { %s45_s18 = ssub.s32 %s1076_s15, %s1124_s16  ;;  %p55_p0 = scmp.ne.s32.totalorder %s1072_s14, %s1068_s13 }
   0xa   : > { %p46_p1 = scmp.eq.s32.totalorder %s45_s18, 0  ;;  %p56_p2 = scmp.eq.s32.totalorder %s1076_s15, 0 }
   0xb   : > { %p874_p4 = scmp.lt.s32.totalorder %s1076_s15, 2  ;;  %s149_s20 = sand.u32 1, %s1076_s15  }
   0xc   : > { %s1135_s19 = scalar_select %p46_p1, %s1072_s14, %s48_s17  }
   0xd   : > { %p57_p5 = por %p56_p2, %p55_p0  ;;  %s151_s21 = sand.u32 1, %s1072_s14  }
   0xe   : > { %s670_s22 = sshll.u32 %s151_s21, 8  ;;  %s814_s23 = sshll.u32 %s1076_s15, 8 }
   0xf   : > { %s158_s26 = scalar_lea.hbm %s1348_s1, %s814_s23  ;;  %s153_s28 = scalar_lea.vmem [#allocation5], %s670_s22 }
  0x10   : > { %s159_s27 = sshll.u32 %s158_s26, 4  ;;  %s161_s29 = sshll.u32 %s153_s28, 4  ;;  %s160_s27 = int_to_ptr.hbm [resolvable:$true] %s159_s27  ;;  %s162_s29 = int_to_ptr.vmem [resolvable:$true] %s161_s29 }
  0x11   : > { %p1150_p6 = pnand %p874_p4, %p57_p5  ;;  %s1154_s4 = scalar_lea.sflag [#allocation6], %s149_s20 }
  0x12   : > { %s916_s5 = sshra.s32 %s160_s27, 4  ;;  %s923_s9 = scalar_lea.hbm %s1348_s1, 512  ;;  %s917_s5 = int_to_ptr.hbm [resolvable:$true] %s916_s5 }
  0x13   : > { %s918_s6 = scalar_lea.hbm %s917_s5, 256  ;;  %p920_p8 = pneg %p1150_p6 }
  0x14   : > { %p919_p7 = scmp.ne.s32.totalorder %s917_s5, %s918_s6  ;;  %p924_p11 = scmp.lt.s32.totalorder %s917_s5, %s1348_s1 }
  0x15   : > { %p925_p12 = scmp.lt.s32.totalorder %s923_s9, %s918_s6 }
  0x16   : > { %p921_p9 = pnand %p920_p8, %p919_p7 }
  0x17   : > { %p926_p13 = por %p925_p12, %p924_p11 }
  0x18   : > { %p922_p10 = pneg %p921_p9 }
  0x1a   : > { %p927_p1 = pnand %p926_p13, %p922_p10 }
  0x1c   : > { %930 = shalt.err (!%p927_p1)
}
  0x1d   : > { %s1078_s17 = smov 256   ;;  %s1079_s18 = smov 16  }
  0x1e   : > { %865 = dma.hbm_to_vmem [thread:$0]  (!%p1150_p6), %s160_s27, 4096, %s162_s29, %s1154_s4, %s1078_s17, %s1078_s17, %s1079_s18  }
  0x1f   : > { %s1171_s20 = sadd.s32 4294967295, %s1076_s15   ;;  %s666_s22 = sadd.s32 4294967294, %s1076_s15  }
  0x20   : > { %p61_p2 = scmp.ne.s32.totalorder %s1068_s13, %s1064_s12  ;;  %p62_p4 = scmp.eq.s32.totalorder %s1171_s20, 0 }
  0x21   : > { %p111_p5 = scmp.eq.s32.totalorder %s1171_s20, 1  ;;  %p117_p7 = scmp.eq.s32.totalorder %s666_s22, 1 }
  0x22   : > { %p1180_p9 = por %p62_p4, %p61_p2  ;;  %p667_p10 = scmp.ge.s32.totalorder %s1076_s15, 1 }
  0x23   : > { %p1188_p11 = por %p111_p5, %p55_p0  ;;  %p1192_p12 = por %p117_p7, %p61_p2 }
  0x24   : > { %p124_p13 = scmp.lt.s32.totalorder %s1076_s15, 3  ;;  %s1356_s0 = sld [smem:[#allocation12_spill]] }
  0x25   : > { %s1080_s5 = smov [#allocation2]   ;;  %s673_s7 = sshll.u32 %s151_s21, 2 }
  0x26   : > { %p1200_p1 = pnand %p667_p10, %p124_p13  ;;  %s138_s6 = sshll.u32 %s1080_s5, 4  ;;  %s139_s6 = int_to_ptr.vmem [resolvable:$true] %s138_s6 }
  0x27   : > { %s674_s8 = sshll.u32 %s1076_s15, 2  ;;  %s175_s18 = scalar_lea.vmem [#allocation7], %s673_s7 }
  0x28   : > { %p858_p0 = pneg %p1200_p1  ;;  %s179_s11 = scalar_lea.hbm %s1349_s2, %s674_s8 }
  0x29   : > { %s181_s17 = sshll.u32 %s179_s11, 4  ;;  %s183_s22 = sshll.u32 %s175_s18, 4  ;;  %s182_s17 = int_to_ptr.hbm [resolvable:$true] %s181_s17  ;;  %s184_s22 = int_to_ptr.vmem [resolvable:$true] %s183_s22 }
  0x2a   : > { %s136_s28 = sshll.u32 %s1356_s0, 4  ;;  %p859_p2 = pnand %p858_p0, %p62_p4  ;;  %s137_s28 = int_to_ptr.hbm [resolvable:$true] %s136_s28 }
  0x2b   : > { %s976_s26 = sshra.s32 %s182_s17, 4  ;;  %s983_s0 = scalar_lea.hbm %s1349_s2, 8  ;;  %s977_s26 = int_to_ptr.hbm [resolvable:$true] %s976_s26 }
  0x2c   : > { %861 = dma.hbm_to_vmem [thread:$0]  (!%p859_p2), %s137_s28, 128, %s139_s6, [#allocation3]  }
  0x2d   : > { %s978_s21 = scalar_lea.hbm %s977_s26, 4  ;;  %p984_p13 = scmp.lt.s32.totalorder %s977_s26, %s1349_s2 }
  0x2e   : > { %p979_p5 = scmp.ne.s32.totalorder %s977_s26, %s978_s21  ;;  %p985_p0 = scmp.lt.s32.totalorder %s983_s0, %s978_s21 }
  0x30   : > { %p981_p7 = pnand %p979_p5, %p920_p8  ;;  %p986_p3 = por %p985_p0, %p984_p13 }
  0x32   : > { %p982_p10 = pneg %p981_p7 }
  0x34   : > { %p987_p2 = pnand %p986_p3, %p982_p10 }
  0x36   : > { %990 = shalt.err (!%p987_p2)
}
  0x37   : > { %868 = dma.hbm_to_vmem [thread:$0]  (!%p1150_p6), %s182_s17, 64, %s184_s22, %s1154_s4  }
  0x38   : > { %192 = sbr.rel (%p1200_p1) target bundleno = 377 (0x179), region = 32 }
  0x3d   : > { %1051 = dma.done.wait (%p62_p4), [#allocation3], 128  }
  0x3e   : > { %1053 = vsyncadd (%p62_p4), [#allocation3], 4294967168  ;;  %s199_s0 = sand.u32 1, %s1171_s20   ;;  %s1234_s28 = sand.u32 1, %s1068_s13  }
  0x3f   : > { %s677_s6 = sshll.u32 %s1234_s28, 8  ;;  %s200_s30 = scalar_lea.sflag [#allocation6], %s199_s0 }
  0x40   : > { %s1237_s7 = scalar_lea.vmem [#allocation5], %s677_s6 }
  0x41   : > { %1055 = dma.done.wait (%p1180_p9), %s200_s30, 4160  }
  0x42   : > { %1057 = vsyncadd (%p1180_p9), %s200_s30, 4294963136  ;;  %v738_v0 = vld [vmem:[%s1237_s7 + $0xe0] sm:$0xf]  ;;  %v830_v1 = vld [vmem:[%s1237_s7 + $0xec] sm:$0xf0]  ;;  %s678_s4 = sshll.u32 %s1234_s28, 2 }
  0x43   : > { %v829_v2 = vld [vmem:[%s1237_s7 + $0xe4] sm:$0xf]  ;;  %v739_v3 = vor.u32 %v830_v1, %v738_v0  ;;  %v740_v4 = vld [vmem:[%s1237_s7 + $0xf0] sm:$0xf0]  ;;  %v730_v5 = vld [vmem:[%s1237_s7 + $0xc0] sm:$0xf] }
  0x44   : > { %v828_v6 = vld [vmem:[%s1237_s7 + $0xcc] sm:$0xf0]  ;;  %v743_v7 = vor.u32 %v829_v2, %v740_v4  ;;  %v827_v8 = vld [vmem:[%s1237_s7 + $0xc4] sm:$0xf]  ;;  %v732_v9 = vld [vmem:[%s1237_s7 + $0xd0] sm:$0xf0] }
  0x45   : > { %347 = vmatpush.bf16.msra.mxu0 %v739_v3  ;;  %v731_v10 = vor.u32 %v828_v6, %v730_v5  ;;  %v735_v11 = vor.u32 %v827_v8, %v732_v9  ;;  %v722_v12 = vld [vmem:[%s1237_s7 + $0xa0] sm:$0xf]  ;;  %v826_v13 = vld [vmem:[%s1237_s7 + $0xac] sm:$0xf0]  ;;  %v825_v14 = vld [vmem:[%s1237_s7 + $0xa4] sm:$0xf] }
  0x46   : > { %360 = vmatpush.bf16.msra.mxu1 %v743_v7  ;;  %v724_v15 = vld [vmem:[%s1237_s7 + $0xb0] sm:$0xf0]  ;;  %v723_v16 = vor.u32 %v826_v13, %v722_v12  ;;  %v714_v18 = vld [vmem:[%s1237_s7 + $0x80] sm:$0xf]  ;;  %v824_v19 = vld [vmem:[%s1237_s7 + $0x8c] sm:$0xf0] }
  0x47   : > { %v727_v17 = vor.u32 %v825_v14, %v724_v15  ;;  %v823_v20 = vld [vmem:[%s1237_s7 + $0x84] sm:$0xf]  ;;  %v716_v21 = vld [vmem:[%s1237_s7 + $0x90] sm:$0xf0]  ;;  %v706_v22 = vld [vmem:[%s1237_s7 + $0x60] sm:$0xf]  ;;  %v715_v24 = vor.u32 %v824_v19, %v714_v18 }
  0x48   : > { %v822_v23 = vld [vmem:[%s1237_s7 + $0x6c] sm:$0xf0]  ;;  %v774_v25 = vld [vmem:[%s1237_s7 + $0xe8] sm:$0xf]  ;;  %v838_v26 = vld [vmem:[%s1237_s7 + $0xf4] sm:$0xf0]  ;;  %v719_v28 = vor.u32 %v823_v20, %v716_v21 }
  0x49   : > { %348 = vmatpush.bf16.msra.mxu0 %v731_v10  ;;  %v770_v27 = vld [vmem:[%s1237_s7 + $0xc8] sm:$0xf]  ;;  %v775_v29 = vor.u32 %v838_v26, %v774_v25  ;;  %v837_v30 = vld [vmem:[%s1237_s7 + $0xd4] sm:$0xf0]  ;;  %v806_v31 = vld [vmem:[%s1237_s7 + $0xec] sm:$0xf]  ;;  %v707_v39 = vor.u32 %v822_v23, %v706_v22 }
  0x4a   : > { %361 = vmatpush.bf16.msra.mxu1 %v735_v11  ;;  %v846_v32 = vld [vmem:[%s1237_s7 + $0xf8] sm:$0xf0]  ;;  %v821_v33 = vld [vmem:[%s1237_s7 + $0x64] sm:$0xf]  ;;  %v708_v34 = vld [vmem:[%s1237_s7 + $0x70] sm:$0xf0]  ;;  %v771_v37 = vor.u32 %v837_v30, %v770_v27 }
  0x4b   : > { %v807_v35 = vor.u32 %v846_v32, %v806_v31  ;;  %v802_v36 = vld [vmem:[%s1237_s7 + $0xcc] sm:$0xf]  ;;  %444 = vmatpush.bf16.msra.mxu2 %v775_v29  ;;  %v845_v38 = vld [vmem:[%s1237_s7 + $0xd8] sm:$0xf0]  ;;  %v698_v40 = vld [vmem:[%s1237_s7 + $0x40] sm:$0xf]  ;;  %v711_v44 = vor.u32 %v821_v33, %v708_v34 }
  0x4c   : > { %v766_v41 = vld [vmem:[%s1237_s7 + $0xa8] sm:$0xf]  ;;  %v836_v42 = vld [vmem:[%s1237_s7 + $0xb4] sm:$0xf0]  ;;  %v803_v43 = vor.u32 %v845_v38, %v802_v36  ;;  %v820_v45 = vld [vmem:[%s1237_s7 + $0x4c] sm:$0xf0] }
  0x4d   : > { %349 = vmatpush.bf16.msra.mxu0 %v723_v16  ;;  %530 = vmatpush.bf16.msra.mxu3 %v807_v35  ;;  %v798_v46 = vld [vmem:[%s1237_s7 + $0xac] sm:$0xf]  ;;  %v844_v47 = vld [vmem:[%s1237_s7 + $0xb8] sm:$0xf0]  ;;  %v819_v48 = vld [vmem:[%s1237_s7 + $0x44] sm:$0xf]  ;;  %v767_v51 = vor.u32 %v836_v42, %v766_v41  ;;  %v699_v52 = vor.u32 %v820_v45, %v698_v40 }
  0x4e   : > { %362 = vmatpush.bf16.msra.mxu1 %v727_v17  ;;  %v700_v49 = vld [vmem:[%s1237_s7 + $0x50] sm:$0xf0]  ;;  %v690_v50 = vld [vmem:[%s1237_s7 + $0x20] sm:$0xf]  ;;  %s1281_s23 = scalar_lea.vmem [#allocation7], %s678_s4  ;;  %v799_v55 = vor.u32 %v844_v47, %v798_v46  ;;  %v243_v12 = vld [vmem:[#allocation2] sm:$0xff] }
  0x4f   : > { %445 = vmatpush.bf16.msra.mxu2 %v771_v37  ;;  %v762_v53 = vld [vmem:[%s1237_s7 + $0x88] sm:$0xf]  ;;  %v835_v54 = vld [vmem:[%s1237_s7 + $0x94] sm:$0xf0]  ;;  %v703_v56 = vor.u32 %v819_v48, %v700_v49  ;;  %v818_v57 = vld [vmem:[%s1237_s7 + $0x2c] sm:$0xf0]  ;;  %v244_v17 = vpack.c.bf16 %v243_v12, %v243_v12 }
  0x50   : > { %v794_v58 = vld [vmem:[%s1237_s7 + $0x8c] sm:$0xf]  ;;  %v843_v59 = vld [vmem:[%s1237_s7 + $0x98] sm:$0xf0]  ;;  %v817_v60 = vld [vmem:[%s1237_s7 + $0x24] sm:$0xf]  ;;  %v763_v62 = vor.u32 %v835_v54, %v762_v53  ;;  %v691_v63 = vor.u32 %v818_v57, %v690_v50 }
  0x51   : > { %350 = vmatpush.bf16.msra.mxu0 %v715_v24  ;;  %531 = vmatpush.bf16.msra.mxu3 %v803_v43  ;;  %v692_v61 = vld [vmem:[%s1237_s7 + $0x30] sm:$0xf0]  ;;  %v682_v0 = vld [vmem:[%s1237_s7] sm:$0xf]  ;;  %v758_v1 = vld [vmem:[%s1237_s7 + $0x68] sm:$0xf]  ;;  %v795_v3 = vor.u32 %v843_v59, %v794_v58 }
  0x52   : > { %363 = vmatpush.bf16.msra.mxu1 %v719_v28  ;;  %v834_v2 = vld [vmem:[%s1237_s7 + $0x74] sm:$0xf0]  ;;  %v695_v4 = vor.u32 %v817_v60, %v692_v61  ;;  %v816_v5 = vld [vmem:[%s1237_s7 + $0xc] sm:$0xf0]  ;;  %v790_v6 = vld [vmem:[%s1237_s7 + $0x6c] sm:$0xf] }
  0x53   : > { %446 = vmatpush.bf16.msra.mxu2 %v767_v51  ;;  %v842_v7 = vld [vmem:[%s1237_s7 + $0x78] sm:$0xf0]  ;;  %v815_v8 = vld [vmem:[%s1237_s7 + $0x4] sm:$0xf]  ;;  %v684_v9 = vld [vmem:[%s1237_s7 + $0x10] sm:$0xf0]  ;;  %v759_v10 = vor.u32 %v834_v2, %v758_v1  ;;  %v683_v11 = vor.u32 %v816_v5, %v682_v0 }
  0x54   : > { %v754_v13 = vld [vmem:[%s1237_s7 + $0x48] sm:$0xf]  ;;  %v833_v14 = vld [vmem:[%s1237_s7 + $0x54] sm:$0xf0]  ;;  %v791_v15 = vor.u32 %v842_v7, %v790_v6  ;;  %v687_v16 = vor.u32 %v815_v8, %v684_v9  ;;  %v786_v21 = vld [vmem:[%s1237_s7 + $0x4c] sm:$0xf] }
  0x55   : > { %351 = vmatpush.bf16.msra.mxu0 %v707_v39  ;;  %532 = vmatpush.bf16.msra.mxu3 %v799_v55  ;;  %v755_v18 = vor.u32 %v833_v14, %v754_v13  ;;  %v750_v19 = vld [vmem:[%s1237_s7 + $0x28] sm:$0xf]  ;;  %v832_v20 = vld [vmem:[%s1237_s7 + $0x34] sm:$0xf0]  ;;  %v841_v23 = vld [vmem:[%s1237_s7 + $0x58] sm:$0xf0] }
  0x56   : > { %364 = vmatpush.bf16.msra.mxu1 %v711_v44  ;;  %v751_v22 = vor.u32 %v832_v20, %v750_v19  ;;  %v787_v24 = vor.u32 %v841_v23, %v786_v21  ;;  %v746_v25 = vld [vmem:[%s1237_s7 + $0x8] sm:$0xf]  ;;  %v831_v26 = vld [vmem:[%s1237_s7 + $0x14] sm:$0xf0]  ;;  %v782_v27 = vld [vmem:[%s1237_s7 + $0x2c] sm:$0xf] }
  0x57   : > { %447 = vmatpush.bf16.msra.mxu2 %v763_v62  ;;  %v747_v28 = vor.u32 %v831_v26, %v746_v25  ;;  %v840_v29 = vld [vmem:[%s1237_s7 + $0x38] sm:$0xf0]  ;;  %v778_v31 = vld [vmem:[%s1237_s7 + $0xc] sm:$0xf]  ;;  %v261_v34 = vld [vmem:[%s1281_s23] sm:$0x3] }
  0x58   : > { %v783_v30 = vor.u32 %v840_v29, %v782_v27  ;;  %v839_v32 = vld [vmem:[%s1237_s7 + $0x18] sm:$0xf0]  ;;  %v263_v35 = vperm.slane %v261_v34, 0  ;;  %v264_v36 = vperm.slane %v261_v34, 1  ;;  %s847_s29 = sshll.u32 %s1171_s20, 4  ;;  %s679_s10 = sshll.u32 %s1234_s28, 4 }
  0x59   : > { %352 = vmatpush.bf16.msra.mxu0 %v699_v52  ;;  %533 = vmatpush.bf16.msra.mxu3 %v795_v3  ;;  %v779_v33 = vor.u32 %v839_v32, %v778_v31  ;;  %v914_v48 = vld [vmem:[%s1281_s23 + $0x2] ss:$0 sm:$0xff]  ;;  %s557_s18 = scalar_lea.hbm %s1350_s3, %s847_s29  ;;  %s241_s22 = scalar_lea.vmem [#allocation8], %s679_s10  ;;  %v915_v51 = vld [vmem:[%s1281_s23 + $0x3] ss:$0 sm:$0xff] }
  0x5a   : > { %365 = vmatpush.bf16.msra.mxu1 %v703_v56  ;;  %s558_s26 = sshll.u32 %s241_s22, 4  ;;  %s560_s21 = sshll.u32 %s557_s18, 4  ;;  %s559_s26 = int_to_ptr.vmem [resolvable:$true] %s558_s26  ;;  %s561_s21 = int_to_ptr.hbm [resolvable:$true] %s560_s21 }
  0x5b   : > { %448 = vmatpush.bf16.msra.mxu2 %v759_v10  ;;  %s546_s20 = scalar_lea.sflag [#allocation4], %s1234_s28  ;;  %s1020_s27 = sshra.s32 %s561_s21, 4  ;;  %s1021_s27 = int_to_ptr.hbm [resolvable:$true] %s1020_s27 }
  0x5c   : > { %s1022_s5 = scalar_lea.hbm %s1021_s27, 16  ;;  %s1026_s0 = scalar_lea.hbm %s1350_s3, 32 }
  0x5d   : > { %353 = vmatpush.bf16.msra.mxu0 %v691_v63  ;;  %534 = vmatpush.bf16.msra.mxu3 %v791_v15  ;;  %p1023_p3 = scmp.ne.s32.totalorder %s1021_s27, %s1022_s5  ;;  %p1027_p4 = scmp.lt.s32.totalorder %s1021_s27, %s1350_s3 }
  0x5e   : > { %366 = vmatpush.bf16.msra.mxu1 %v695_v4  ;;  %p1028_p9 = scmp.lt.s32.totalorder %s1026_s0, %s1022_s5 }
  0x5f   : > { %449 = vmatpush.bf16.msra.mxu2 %v755_v18  ;;  %p1024_p6 = pnand %p1023_p3, %p1188_p11 }
  0x60   : > { %p1029_p1 = por %p1028_p9, %p1027_p4 }
  0x61   : > { %354 = vmatpush.bf16.msra.mxu0 %v683_v11  ;;  %535 = vmatpush.bf16.msra.mxu3 %v787_v24  ;;  %p1025_p8 = pneg %p1024_p6 }
  0x62   : > { %367 = vmatpush.bf16.msra.mxu1 %v687_v16 }
  0x63   : > { %450 = vmatpush.bf16.msra.mxu2 %v751_v22  ;;  %p1030_p5 = pnand %p1029_p1, %p1025_p8 }
  0x64   : > { %355 = vmatmul.bf16.vlgmr.msra.gmra.mxu0 %v244_v17 }
  0x65   : > { %368 = vmatmul.bf16.vlgmr.msra.gmra.mxu1 %v244_v17  ;;  %536 = vmatpush.bf16.msra.mxu3 %v783_v30 }
  0x67   : > { %451 = vmatpush.bf16.msra.mxu2 %v747_v28 }
  0x69   : > { %537 = vmatpush.bf16.msra.mxu3 %v779_v33 }
  0xe1   : > { %v356_v37 = vpop.f32.mrf.mxu0 }
  0xe2   : > { %v357_v38 = vadd.f32 %v356_v37, %v263_v35  ;;  %v369_v39 = vpop.f32.mrf.mxu1 }
  0xe3   : > { %v370_v40 = vadd.f32 %v369_v39, %v264_v36 }
  0xe4   : > { %v373_v41 = vmax.f32 %v357_v38, 0.0 }
  0xe5   : > { %v374_v42 = vmax.f32 %v370_v40, 0.0 }
  0xe7   : > { %v375_v43 = vpack.c.bf16 %v374_v42, %v373_v41 }
  0xe9   : > { %452 = vmatmul.bf16.vlgmr.msra.gmra.mxu2 %v375_v43  ;;  %v358_v44 = vpop.f32.mrf.mxu0  ;;  %v479_v45 = vunpack.c.h.b16 %v375_v43 }
  0xea   : > { %v371_v46 = vpop.f32.mrf.mxu1 }
  0xeb   : > { %v480_v47 = vpack.c.b16 %v479_v45, %v479_v45 }
  0xed   : > { %538 = vmatmul.bf16.vlgmr.msra.gmra.mxu3 %v480_v47 }
 0x16c   : > { %v453_v49 = vpop.f32.mrf.mxu2 }
 0x16d   : > { %v454_v50 = vadd.f32 %v914_v48, %v453_v49 }
 0x16f   : > { %457 = vst [vmem:[%s241_s22] sm:$0xff] %v454_v50 }
 0x170   : > { %v539_v52 = vpop.f32.mrf.mxu3 }
 0x171   : > { %v540_v53 = vadd.f32 %v915_v51, %v539_v52 }
 0x173   : > { %808 = vst [vmem:[%s241_s22 + $0x8] sm:$0xff] %v540_v53 }
 0x174   : > { %v455_v54 = vpop.f32.mrf.mxu2 }
 0x175   : > { %1033 = shalt.err (!%p1030_p5)
}
 0x176   : > { %s1081_s28 = smov 128   ;;  %s1082_s7 = smov 8  }
 0x177   : > { %856 = dma.vmem_to_hbm [thread:$0]  (%p1188_p11), %s559_s26, 256, %s561_s21, %s546_s20, %s1081_s28, %s1081_s28, %s1082_s7  }
 0x178   : > { %v541_v55 = vpop.f32.mrf.mxu3 }
 0x179 PF: > { %s575_s4 = sand.u32 1, %s1064_s12   ;;  %p1358_p7 = scmp.ge.s32.totalorder %s1076_s15, 2 }
 0x17a   : > { %s576_s23 = scalar_lea.sflag [#allocation4], %s575_s4 }
 0x17b   : > { %p870_p10 = pnand %p1358_p7, %p1192_p12 }
 0x17d   : > { %p871_p13 = pneg %p870_p10 }
 0x17f   : > { %1059 = dma.done.wait (%p871_p13), %s576_s23, 256  }
 0x180   : > { %1061 = vsyncadd (%p871_p13), %s576_s23, 4294967040  ;;  %p17_p0 = scmp.ge.s32.totalorder %s1124_s16, 4   ;;  %s1359_s12 = smov %s1068_s13 }
 0x181   : > { %s1360_s13 = smov %s1072_s14  ;;  %s1361_s14 = smov %s1135_s19 }
 0x182   : > { %s1362_s15 = smov %s1124_s16  ;;  %19 = sbr.rel (!%p17_p0) target bundleno = 8 (0x8), region = 94 }
 0x187   :  { %582 = vsyncpa [#allocation3], 1 }
 0x188   :  { %584 = vsyncpa [#allocation3 + $0x1], 1 }
 0x189   :  { %585 = vsyncpa [#allocation6], 1 }
 0x18a   :  { %587 = vsyncpa [#allocation6 + $0x1], 1 }
 0x18b   :  { %588 = vsyncpa [#allocation4], 1 }
 0x18c   :  { %590 = vsyncpa [#allocation4 + $0x1], 1 }

</bundles_post_ra>
